<compile_context>
chip_gen: v6e
topology: v6e:2x2x1
jax: 0.10.0
libtpu: 0.0.40
codegen_flags: <defaults>
</compile_context>

<pallas_src>
import functools
from math import sqrt

import jax
import jax.numpy as jnp
from jax.experimental import pallas as pl
from jax.experimental.pallas import tpu as pltpu


def _style_block_kernel(wmod_ref, x_ref, top_ref, bot_ref, noise_ref, bias_ref, o_ref):
    # wmod_ref : [1, 9, C_out, C_in]   demodulated per-batch 3x3 weights, tap k = kh*3+kw
    # x_ref    : [1, C_in, TH*W]       row-tile of x, spatial flattened on lanes
    # top_ref  : [1, 1, C_in, W]       row just above the tile (zeros at image top)
    # bot_ref  : [1, 1, C_in, W]       row just below the tile (zeros at image bottom)
    # noise_ref: [1, 1, TH*W]          scale_noise * noise, flattened
    # bias_ref : [C_out, 1]
    # o_ref    : [1, C_out, TH*W]
    c_in = x_ref.shape[1]
    thw = x_ref.shape[2]
    w = top_ref.shape[3]
    c_out = o_ref.shape[1]
    pad = 8  # sentinel lanes so every static tap slice stays in bounds

    xt = x_ref[0]                                    # [C_in, TH*W]
    top = top_ref[0, 0]                              # [C_in, W]
    bot = bot_ref[0, 0]                              # [C_in, W]
    z = jnp.zeros((c_in, pad), dtype=xt.dtype)
    # [C_in, pad + W + TH*W + W + pad]  ==  rows (-1 .. TH) of the padded tile, flattened
    xflat = jnp.concatenate([z, top, xt, bot, z], axis=-1)

    # Horizontal-edge masks (conv zero padding in W handled by masking).
    col = jax.lax.broadcasted_iota(jnp.int32, (1, thw), 1) % w
    mask_l = col != 0            # left-neighbor tap invalid at w == 0
    mask_r = col != (w - 1)      # right-neighbor tap invalid at w == W-1

    acc = jnp.zeros((c_out, thw), dtype=jnp.float32)
    for kw in range(3):
        part = jnp.zeros((c_out, thw), dtype=jnp.float32)
        for kh in range(3):
            start = pad + kh * w + (kw - 1)          # static lane offset of this tap
            xs = xflat[:, start:start + thw]         # [C_in, TH*W]
            wk = wmod_ref[0, kh * 3 + kw]            # [C_out, C_in]
            part = part + jnp.dot(wk, xs, preferred_element_type=jnp.float32)
        if kw == 0:
            part = jnp.where(mask_l, part, 0.0)
        elif kw == 2:
            part = jnp.where(mask_r, part, 0.0)
        acc = acc + part

    acc = acc + noise_ref[0]                         # [1, TH*W] broadcast over channels
    acc = acc + bias_ref[...]                        # [C_out, 1] broadcast over lanes
    acc = jnp.where(acc >= 0, acc, 0.2 * acc)        # LeakyReLU(0.2)
    o_ref[0] = acc.astype(o_ref.dtype)


def _pick_block_h(h, w, c_in, c_out, budget_bytes=4 * 1024 * 1024):
    """Largest row-tile TH dividing H with lane-dense blocks under a VMEM budget."""
    divs = [d for d in range(1, h + 1) if h % d == 0]
    cand = [d for d in divs if (d * w) % 128 == 0]
    if not cand:
        return h  # tiny layer: one full-image block per batch (block == full dims)
    fitting = [d for d in cand if max(c_in, c_out) * d * w * 4 <= budget_bytes]
    return max(fitting) if fitting else min(cand)


@functools.partial(jax.jit, static_argnames=("block_h",))
def style_block_forward(x, w, lin_w, lin_b, conv_w, scale_noise, conv_bias, noise,
                        *, block_h=None):
    B, C_in, H, Wd = x.shape
    C_out = conv_w.shape[0]
    W_DIM = w.shape[1]
    eps = 1e-8

    # ---- style + weight modulation / demodulation (tiny; hoisted to the wrapper) ----
    c_lin = 1.0 / sqrt(W_DIM)
    c_conv = 1.0 / sqrt(C_in * 3 * 3)
    s = w @ (lin_w * c_lin).T + lin_b                               # [B, C_in]
    wmod = (conv_w * c_conv)[None] * s[:, None, :, None, None]      # [B, C_out, C_in, 3, 3]
    sigma_inv = jax.lax.rsqrt(jnp.sum(wmod * wmod, axis=(2, 3, 4), keepdims=True) + eps)
    wmod = wmod * sigma_inv
    # reorder taps leading: [B, 9, C_out, C_in], tap index k = kh*3 + kw
    wmod_r = jnp.transpose(wmod, (0, 3, 4, 1, 2)).reshape(B, 9, C_out, C_in)

    # ---- spatial tiling over output rows ----
    TH = _pick_block_h(H, Wd, C_in, C_out) if block_h is None else int(block_h)
    if H % TH != 0:
        raise ValueError(f"block_h={TH} must divide H={H}")
    if (TH * Wd) % 128 != 0 and TH != H:
        raise ValueError(f"TH*W={TH*Wd} must be a multiple of 128 (or TH == H)")
    nH = H // TH
    THW = TH * Wd

    x_flat = x.reshape(B, C_in, H * Wd)

    # Halo rows for each tile (zeros at the image borders) — tiny side arrays.
    xz = jnp.pad(x, ((0, 0), (0, 0), (1, 1), (0, 0)))               # [B, C_in, H+2, W]
    halo_top = jnp.transpose(xz[:, :, 0:H:TH, :], (0, 2, 1, 3))     # [B, nH, C_in, W]
    halo_bot = jnp.transpose(xz[:, :, TH + 1::TH, :], (0, 2, 1, 3)) # [B, nH, C_in, W]

    if noise is None:
        noise_s = jnp.zeros((B, 1, H * Wd), dtype=x.dtype)
    else:
        noise_s = (scale_noise.reshape(1, 1, 1, 1) * noise).reshape(B, 1, H * Wd)
    noise_s = noise_s.astype(jnp.float32)
    bias2 = conv_bias.reshape(C_out, 1).astype(jnp.float32)

    out = pl.pallas_call(
        _style_block_kernel,
        out_shape=jax.ShapeDtypeStruct((B, C_out, H * Wd), x.dtype),
        grid=(B, nH),
        in_specs=[
            pl.BlockSpec((1, 9, C_out, C_in), lambda b, t: (b, 0, 0, 0)),   # wmod (per batch)
            pl.BlockSpec((1, C_in, THW), lambda b, t: (b, 0, t)),           # x row-tile
            pl.BlockSpec((1, 1, C_in, Wd), lambda b, t: (b, t, 0, 0)),      # halo above
            pl.BlockSpec((1, 1, C_in, Wd), lambda b, t: (b, t, 0, 0)),      # halo below
            pl.BlockSpec((1, 1, THW), lambda b, t: (b, 0, t)),              # scaled noise
            pl.BlockSpec((C_out, 1), lambda b, t: (0, 0)),                  # bias
        ],
        out_specs=pl.BlockSpec((1, C_out, THW), lambda b, t: (b, 0, t)),
        compiler_params=pltpu.CompilerParams(
            dimension_semantics=("parallel", "parallel"),
            vmem_limit_bytes=48 * 1024 * 1024),
    )(wmod_r, x_flat, halo_top, halo_bot, noise_s, bias2)

    return out.reshape(B, C_out, H, Wd)


def style_block_reference(x, w, lin_w, lin_b, conv_w, scale_noise, conv_bias, noise):
    """Independent pure-JAX reference (2-D padding + per-tap einsum)."""
    B, C_in, H, Wd = x.shape
    C_out = conv_w.shape[0]
    W_DIM = w.shape[1]
    c_lin = 1.0 / sqrt(W_DIM)
    c_conv = 1.0 / sqrt(C_in * 3 * 3)
    s = w @ (lin_w * c_lin).T + lin_b
    wmod = (conv_w * c_conv)[None] * s[:, None, :, None, None]
    sigma_inv = jax.lax.rsqrt(jnp.sum(wmod * wmod, axis=(2, 3, 4), keepdims=True) + 1e-8)
    wmod = wmod * sigma_inv
    xp = jnp.pad(x, ((0, 0), (0, 0), (1, 1), (1, 1)))
    out = jnp.zeros((B, C_out, H, Wd), jnp.float32)
    for kh in range(3):
        for kw in range(3):
            xs = xp[:, :, kh:kh + H, kw:kw + Wd]
            out = out + jnp.einsum('boi,bihw->bohw', wmod[:, :, :, kh, kw], xs)
    if noise is not None:
        out = out + scale_noise.reshape(1, 1, 1, 1) * noise
    out = out + conv_bias.reshape(1, C_out, 1, 1)
    return jnp.where(out >= 0, out, 0.2 * out)


if __name__ == "__main__":
    B, C_in, C_out, H, Wd = 2, 4, 8, 16, 16
    W_DIM = 32

    key = jax.random.PRNGKey(0)
    k_x, k_w, k_lw, k_cw, k_n, k_b, k_sn = jax.random.split(key, 7)

    x = jax.random.normal(k_x, (B, C_in, H, Wd), dtype=jnp.float32)
    w = jax.random.normal(k_w, (B, W_DIM), dtype=jnp.float32)
    noise = jax.random.normal(k_n, (B, 1, H, Wd), dtype=jnp.float32)

    # Parameters (shapes from the module __init__; non-zero values to exercise all paths).
    lin_w = jax.random.normal(k_lw, (C_in, W_DIM), dtype=jnp.float32)      # EqualizedWeight([C_in, W_DIM])
    lin_b = jnp.ones((C_in,), dtype=jnp.float32)                           # bias = 1.0
    conv_w = jax.random.normal(k_cw, (C_out, C_in, 3, 3), dtype=jnp.float32)
    scale_noise = 0.3 * jax.random.normal(k_sn, (1,), dtype=jnp.float32)
    conv_bias = 0.1 * jax.random.normal(k_b, (C_out,), dtype=jnp.float32)

    ref = style_block_reference(x, w, lin_w, lin_b, conv_w, scale_noise, conv_bias, noise)

    # Multi-tile path (block_h=8 -> 2 spatial tiles per batch, exercises the halo logic).
    out = style_block_forward(x, w, lin_w, lin_b, conv_w, scale_noise, conv_bias, noise,
                              block_h=8)
    out = jax.block_until_ready(out)
    assert out.shape == (B, C_out, H, Wd)
    err = float(jnp.max(jnp.abs(out - ref)))
    assert jnp.allclose(out, ref, atol=1e-3, rtol=1e-3), f"mismatch (tiled): max abs err {err}"

    # Auto-tiled path (falls back to a single full-image block at this small resolution).
    out2 = jax.block_until_ready(
        style_block_forward(x, w, lin_w, lin_b, conv_w, scale_noise, conv_bias, noise))
    err2 = float(jnp.max(jnp.abs(out2 - ref)))
    assert jnp.allclose(out2, ref, atol=1e-3, rtol=1e-3), f"mismatch (auto): max abs err {err2}"

    print("KERNEL_OK")
</pallas_src>

<mosaic_0001>
module attributes {stable_mosaic.version = 11 : i64} {
  func.func @_style_block_kernel(%arg0: i32, %arg1: i32, %arg2: memref<1x9x8x4xf32, #tpu.memory_space<vmem>>, %arg3: memref<1x4x128xf32, #tpu.memory_space<vmem>>, %arg4: memref<1x1x4x16xf32, #tpu.memory_space<vmem>>, %arg5: memref<1x1x4x16xf32, #tpu.memory_space<vmem>>, %arg6: memref<1x1x128xf32, #tpu.memory_space<vmem>>, %arg7: memref<8x1xf32, #tpu.memory_space<vmem>>, %arg8: memref<1x8x128xf32, #tpu.memory_space<vmem>>) attributes {dimension_semantics = [#tpu.dimension_semantics<parallel>, #tpu.dimension_semantics<parallel>], iteration_bounds = array<i64: 2, 2>, scalar_prefetch = 0 : i64, scratch_operands = 0 : i64, tpu.core_type = #tpu.core_type<tc>, window_params = [{transform_indices = @transform_0, window_bounds = array<i64: 1, 9, 8, 4>}, {transform_indices = @transform_1, window_bounds = array<i64: 1, 4, 128>}, {transform_indices = @transform_2, window_bounds = array<i64: 1, 1, 4, 16>}, {transform_indices = @transform_3, window_bounds = array<i64: 1, 1, 4, 16>}, {transform_indices = @transform_4, window_bounds = array<i64: 1, 1, 128>}, {pipeline_mode = #tpu.pipeline_mode<synchronous>, transform_indices = @transform_5, window_bounds = array<i64: 8, 1>}, {transform_indices = @transform_6, window_bounds = array<i64: 1, 8, 128>}]} {
    %c0 = arith.constant 0 : index
    %c0_0 = arith.constant 0 : index
    %c0_1 = arith.constant 0 : index
    %0 = vector.load %arg3[%c0, %c0_0, %c0_1] : memref<1x4x128xf32, #tpu.memory_space<vmem>>, vector<1x4x128xf32>
    %1 = vector.shape_cast %0 : vector<1x4x128xf32> to vector<4x128xf32>
    %c0_2 = arith.constant 0 : index
    %c0_3 = arith.constant 0 : index
    %c0_4 = arith.constant 0 : index
    %c0_5 = arith.constant 0 : index
    %2 = vector.load %arg4[%c0_2, %c0_3, %c0_4, %c0_5] : memref<1x1x4x16xf32, #tpu.memory_space<vmem>>, vector<1x1x4x16xf32>
    %3 = vector.shape_cast %2 : vector<1x1x4x16xf32> to vector<4x16xf32>
    %c0_6 = arith.constant 0 : index
    %c0_7 = arith.constant 0 : index
    %c0_8 = arith.constant 0 : index
    %c0_9 = arith.constant 0 : index
    %4 = vector.load %arg5[%c0_6, %c0_7, %c0_8, %c0_9] : memref<1x1x4x16xf32, #tpu.memory_space<vmem>>, vector<1x1x4x16xf32>
    %5 = vector.shape_cast %4 : vector<1x1x4x16xf32> to vector<4x16xf32>
    %cst = arith.constant 0.000000e+00 : f32
    %6 = vector.broadcast %cst : f32 to vector<4x8xf32>
    %7 = tpu.concatenate %6, %3, %1, %5, %6 in 1 : vector<4x8xf32>, vector<4x16xf32>, vector<4x128xf32>, vector<4x16xf32>, vector<4x8xf32> -> vector<4x176xf32>
    %8 = tpu.iota {dimensions = array<i32: 1>} : vector<1x128xi32>
    %c16_i32 = arith.constant 16 : i32
    %c0_i32 = arith.constant 0 : i32
    %9 = arith.cmpi eq, %c16_i32, %c0_i32 : i32
    %c1_i32 = arith.constant 1 : i32
    %10 = arith.select %9, %c1_i32, %c16_i32 : i32
    %11 = vector.broadcast %10 : i32 to vector<1x128xi32>
    %12 = arith.remsi %8, %11 : vector<1x128xi32>
    %c0_i32_10 = arith.constant 0 : i32
    %13 = vector.broadcast %c0_i32_10 : i32 to vector<1x128xi32>
    %14 = arith.cmpi ne, %12, %13 : vector<1x128xi32>
    %c0_i32_11 = arith.constant 0 : i32
    %15 = vector.broadcast %c0_i32_11 : i32 to vector<1x128xi32>
    %16 = arith.cmpi slt, %12, %15 : vector<1x128xi32>
    %c0_i32_12 = arith.constant 0 : i32
    %17 = arith.cmpi slt, %10, %c0_i32_12 : i32
    %18 = vector.broadcast %17 : i1 to vector<1x128xi1>
    %19 = vector.broadcast %18 : vector<1x128xi1> to vector<1x128xi1>
    %20 = arith.xori %16, %19 : vector<1x128xi1>
    %21 = arith.andi %20, %14 : vector<1x128xi1>
    %22 = vector.broadcast %10 : i32 to vector<1x128xi32>
    %23 = arith.addi %12, %22 : vector<1x128xi32>
    %24 = arith.select %21, %23, %12 : vector<1x128xi1>, vector<1x128xi32>
    %c0_i32_13 = arith.constant 0 : i32
    %25 = vector.broadcast %c0_i32_13 : i32 to vector<1x128xi32>
    %26 = arith.cmpi ne, %24, %25 : vector<1x128xi32>
    %c15_i32 = arith.constant 15 : i32
    %27 = vector.broadcast %c15_i32 : i32 to vector<1x128xi32>
    %28 = arith.cmpi ne, %24, %27 : vector<1x128xi32>
    %cst_14 = arith.constant 0.000000e+00 : f32
    %29 = vector.broadcast %cst_14 : f32 to vector<8x128xf32>
    %cst_15 = arith.constant 0.000000e+00 : f32
    %30 = vector.broadcast %cst_15 : f32 to vector<8x128xf32>
    %31 = vector.extract_strided_slice %7 {offsets = [0, 7], sizes = [4, 128], strides = [1, 1]} : vector<4x176xf32> to vector<4x128xf32>
    %c0_16 = arith.constant 0 : index
    %c0_17 = arith.constant 0 : index
    %c0_18 = arith.constant 0 : index
    %c0_19 = arith.constant 0 : index
    %32 = vector.load %arg2[%c0_16, %c0_17, %c0_18, %c0_19] : memref<1x9x8x4xf32, #tpu.memory_space<vmem>>, vector<1x1x8x4xf32>
    %33 = vector.shape_cast %32 : vector<1x1x8x4xf32> to vector<8x4xf32>
    %cst_20 = arith.constant dense<0.000000e+00> : vector<8x128xf32>
    %34 = tpu.matmul %33, %31, %cst_20 {dimension_numbers = #tpu.dot_dimension_numbers<[1], [0], [0], [1], [0, 0, 1, 1], [], []>} : vector<8x4xf32>, vector<4x128xf32>, vector<8x128xf32> -> vector<8x128xf32>
    %35 = arith.addf %30, %34 : vector<8x128xf32>
    %36 = vector.extract_strided_slice %7 {offsets = [0, 23], sizes = [4, 128], strides = [1, 1]} : vector<4x176xf32> to vector<4x128xf32>
    %c0_21 = arith.constant 0 : index
    %c3 = arith.constant 3 : index
    %c0_22 = arith.constant 0 : index
    %c0_23 = arith.constant 0 : index
    %37 = vector.load %arg2[%c0_21, %c3, %c0_22, %c0_23] : memref<1x9x8x4xf32, #tpu.memory_space<vmem>>, vector<1x1x8x4xf32>
    %38 = vector.shape_cast %37 : vector<1x1x8x4xf32> to vector<8x4xf32>
    %cst_24 = arith.constant dense<0.000000e+00> : vector<8x128xf32>
    %39 = tpu.matmul %38, %36, %cst_24 {dimension_numbers = #tpu.dot_dimension_numbers<[1], [0], [0], [1], [0, 0, 1, 1], [], []>} : vector<8x4xf32>, vector<4x128xf32>, vector<8x128xf32> -> vector<8x128xf32>
    %40 = arith.addf %35, %39 : vector<8x128xf32>
    %41 = vector.extract_strided_slice %7 {offsets = [0, 39], sizes = [4, 128], strides = [1, 1]} : vector<4x176xf32> to vector<4x128xf32>
    %c0_25 = arith.constant 0 : index
    %c6 = arith.constant 6 : index
    %c0_26 = arith.constant 0 : index
    %c0_27 = arith.constant 0 : index
    %42 = vector.load %arg2[%c0_25, %c6, %c0_26, %c0_27] : memref<1x9x8x4xf32, #tpu.memory_space<vmem>>, vector<1x1x8x4xf32>
    %43 = vector.shape_cast %42 : vector<1x1x8x4xf32> to vector<8x4xf32>
    %cst_28 = arith.constant dense<0.000000e+00> : vector<8x128xf32>
    %44 = tpu.matmul %43, %41, %cst_28 {dimension_numbers = #tpu.dot_dimension_numbers<[1], [0], [0], [1], [0, 0, 1, 1], [], []>} : vector<8x4xf32>, vector<4x128xf32>, vector<8x128xf32> -> vector<8x128xf32>
    %45 = arith.addf %40, %44 : vector<8x128xf32>
    %cst_29 = arith.constant 0.000000e+00 : f32
    %46 = vector.shape_cast %26 : vector<1x128xi1> to vector<1x128xi1>
    %47 = vector.broadcast %46 : vector<1x128xi1> to vector<8x128xi1>
    %48 = vector.broadcast %cst_29 : f32 to vector<8x128xf32>
    %49 = arith.select %47, %45, %48 : vector<8x128xi1>, vector<8x128xf32>
    %50 = arith.addf %29, %49 : vector<8x128xf32>
    %cst_30 = arith.constant 0.000000e+00 : f32
    %51 = vector.broadcast %cst_30 : f32 to vector<8x128xf32>
    %52 = vector.extract_strided_slice %7 {offsets = [0, 8], sizes = [4, 128], strides = [1, 1]} : vector<4x176xf32> to vector<4x128xf32>
    %c0_31 = arith.constant 0 : index
    %c1 = arith.constant 1 : index
    %c0_32 = arith.constant 0 : index
    %c0_33 = arith.constant 0 : index
    %53 = vector.load %arg2[%c0_31, %c1, %c0_32, %c0_33] : memref<1x9x8x4xf32, #tpu.memory_space<vmem>>, vector<1x1x8x4xf32>
    %54 = vector.shape_cast %53 : vector<1x1x8x4xf32> to vector<8x4xf32>
    %cst_34 = arith.constant dense<0.000000e+00> : vector<8x128xf32>
    %55 = tpu.matmul %54, %52, %cst_34 {dimension_numbers = #tpu.dot_dimension_numbers<[1], [0], [0], [1], [0, 0, 1, 1], [], []>} : vector<8x4xf32>, vector<4x128xf32>, vector<8x128xf32> -> vector<8x128xf32>
    %56 = arith.addf %51, %55 : vector<8x128xf32>
    %57 = vector.extract_strided_slice %7 {offsets = [0, 24], sizes = [4, 128], strides = [1, 1]} : vector<4x176xf32> to vector<4x128xf32>
    %c0_35 = arith.constant 0 : index
    %c4 = arith.constant 4 : index
    %c0_36 = arith.constant 0 : index
    %c0_37 = arith.constant 0 : index
    %58 = vector.load %arg2[%c0_35, %c4, %c0_36, %c0_37] : memref<1x9x8x4xf32, #tpu.memory_space<vmem>>, vector<1x1x8x4xf32>
    %59 = vector.shape_cast %58 : vector<1x1x8x4xf32> to vector<8x4xf32>
    %cst_38 = arith.constant dense<0.000000e+00> : vector<8x128xf32>
    %60 = tpu.matmul %59, %57, %cst_38 {dimension_numbers = #tpu.dot_dimension_numbers<[1], [0], [0], [1], [0, 0, 1, 1], [], []>} : vector<8x4xf32>, vector<4x128xf32>, vector<8x128xf32> -> vector<8x128xf32>
    %61 = arith.addf %56, %60 : vector<8x128xf32>
    %62 = vector.extract_strided_slice %7 {offsets = [0, 40], sizes = [4, 128], strides = [1, 1]} : vector<4x176xf32> to vector<4x128xf32>
    %c0_39 = arith.constant 0 : index
    %c7 = arith.constant 7 : index
    %c0_40 = arith.constant 0 : index
    %c0_41 = arith.constant 0 : index
    %63 = vector.load %arg2[%c0_39, %c7, %c0_40, %c0_41] : memref<1x9x8x4xf32, #tpu.memory_space<vmem>>, vector<1x1x8x4xf32>
    %64 = vector.shape_cast %63 : vector<1x1x8x4xf32> to vector<8x4xf32>
    %cst_42 = arith.constant dense<0.000000e+00> : vector<8x128xf32>
    %65 = tpu.matmul %64, %62, %cst_42 {dimension_numbers = #tpu.dot_dimension_numbers<[1], [0], [0], [1], [0, 0, 1, 1], [], []>} : vector<8x4xf32>, vector<4x128xf32>, vector<8x128xf32> -> vector<8x128xf32>
    %66 = arith.addf %61, %65 : vector<8x128xf32>
    %67 = arith.addf %50, %66 : vector<8x128xf32>
    %cst_43 = arith.constant 0.000000e+00 : f32
    %68 = vector.broadcast %cst_43 : f32 to vector<8x128xf32>
    %69 = vector.extract_strided_slice %7 {offsets = [0, 9], sizes = [4, 128], strides = [1, 1]} : vector<4x176xf32> to vector<4x128xf32>
    %c0_44 = arith.constant 0 : index
    %c2 = arith.constant 2 : index
    %c0_45 = arith.constant 0 : index
    %c0_46 = arith.constant 0 : index
    %70 = vector.load %arg2[%c0_44, %c2, %c0_45, %c0_46] : memref<1x9x8x4xf32, #tpu.memory_space<vmem>>, vector<1x1x8x4xf32>
    %71 = vector.shape_cast %70 : vector<1x1x8x4xf32> to vector<8x4xf32>
    %cst_47 = arith.constant dense<0.000000e+00> : vector<8x128xf32>
    %72 = tpu.matmul %71, %69, %cst_47 {dimension_numbers = #tpu.dot_dimension_numbers<[1], [0], [0], [1], [0, 0, 1, 1], [], []>} : vector<8x4xf32>, vector<4x128xf32>, vector<8x128xf32> -> vector<8x128xf32>
    %73 = arith.addf %68, %72 : vector<8x128xf32>
    %74 = vector.extract_strided_slice %7 {offsets = [0, 25], sizes = [4, 128], strides = [1, 1]} : vector<4x176xf32> to vector<4x128xf32>
    %c0_48 = arith.constant 0 : index
    %c5 = arith.constant 5 : index
    %c0_49 = arith.constant 0 : index
    %c0_50 = arith.constant 0 : index
    %75 = vector.load %arg2[%c0_48, %c5, %c0_49, %c0_50] : memref<1x9x8x4xf32, #tpu.memory_space<vmem>>, vector<1x1x8x4xf32>
    %76 = vector.shape_cast %75 : vector<1x1x8x4xf32> to vector<8x4xf32>
    %cst_51 = arith.constant dense<0.000000e+00> : vector<8x128xf32>
    %77 = tpu.matmul %76, %74, %cst_51 {dimension_numbers = #tpu.dot_dimension_numbers<[1], [0], [0], [1], [0, 0, 1, 1], [], []>} : vector<8x4xf32>, vector<4x128xf32>, vector<8x128xf32> -> vector<8x128xf32>
    %78 = arith.addf %73, %77 : vector<8x128xf32>
    %79 = vector.extract_strided_slice %7 {offsets = [0, 41], sizes = [4, 128], strides = [1, 1]} : vector<4x176xf32> to vector<4x128xf32>
    %c0_52 = arith.constant 0 : index
    %c8 = arith.constant 8 : index
    %c0_53 = arith.constant 0 : index
    %c0_54 = arith.constant 0 : index
    %80 = vector.load %arg2[%c0_52, %c8, %c0_53, %c0_54] : memref<1x9x8x4xf32, #tpu.memory_space<vmem>>, vector<1x1x8x4xf32>
    %81 = vector.shape_cast %80 : vector<1x1x8x4xf32> to vector<8x4xf32>
    %cst_55 = arith.constant dense<0.000000e+00> : vector<8x128xf32>
    %82 = tpu.matmul %81, %79, %cst_55 {dimension_numbers = #tpu.dot_dimension_numbers<[1], [0], [0], [1], [0, 0, 1, 1], [], []>} : vector<8x4xf32>, vector<4x128xf32>, vector<8x128xf32> -> vector<8x128xf32>
    %83 = arith.addf %78, %82 : vector<8x128xf32>
    %cst_56 = arith.constant 0.000000e+00 : f32
    %84 = vector.shape_cast %28 : vector<1x128xi1> to vector<1x128xi1>
    %85 = vector.broadcast %84 : vector<1x128xi1> to vector<8x128xi1>
    %86 = vector.broadcast %cst_56 : f32 to vector<8x128xf32>
    %87 = arith.select %85, %83, %86 : vector<8x128xi1>, vector<8x128xf32>
    %88 = arith.addf %67, %87 : vector<8x128xf32>
    %c0_57 = arith.constant 0 : index
    %c0_58 = arith.constant 0 : index
    %c0_59 = arith.constant 0 : index
    %89 = vector.load %arg6[%c0_57, %c0_58, %c0_59] : memref<1x1x128xf32, #tpu.memory_space<vmem>>, vector<1x1x128xf32>
    %90 = vector.shape_cast %89 : vector<1x1x128xf32> to vector<1x128xf32>
    %91 = vector.broadcast %90 : vector<1x128xf32> to vector<8x128xf32>
    %92 = arith.addf %88, %91 : vector<8x128xf32>
    %c0_60 = arith.constant 0 : index
    %c0_61 = arith.constant 0 : index
    %93 = vector.load %arg7[%c0_60, %c0_61] : memref<8x1xf32, #tpu.memory_space<vmem>>, vector<8x1xf32>
    %94 = vector.broadcast %93 : vector<8x1xf32> to vector<8x128xf32>
    %95 = arith.addf %92, %94 : vector<8x128xf32>
    %cst_62 = arith.constant 0.000000e+00 : f32
    %96 = vector.broadcast %cst_62 : f32 to vector<8x128xf32>
    %97 = arith.cmpf oge, %95, %96 : vector<8x128xf32>
    %cst_63 = arith.constant 2.000000e-01 : f32
    %98 = vector.broadcast %cst_63 : f32 to vector<8x128xf32>
    %99 = arith.mulf %98, %95 : vector<8x128xf32>
    %100 = arith.select %97, %95, %99 : vector<8x128xi1>, vector<8x128xf32>
    %c0_64 = arith.constant 0 : index
    %c0_65 = arith.constant 0 : index
    %c0_66 = arith.constant 0 : index
    %101 = vector.load %arg8[%c0_64, %c0_65, %c0_66] : memref<1x8x128xf32, #tpu.memory_space<vmem>>, vector<1x8x128xf32>
    %102 = vector.shape_cast %101 : vector<1x8x128xf32> to vector<8x128xf32>
    %103 = vector.shape_cast %100 : vector<8x128xf32> to vector<1x8x128xf32>
    tpu.vector_store %arg8[%c0_64, %c0_65, %c0_66], %103 {strides = array<i32>} : memref<1x8x128xf32, #tpu.memory_space<vmem>>, vector<1x8x128xf32>,
    return
  }
  func.func @transform_0(%arg0: i32, %arg1: i32) -> (i32, i32, i32, i32) {
    %c0_i32 = arith.constant 0 : i32
    %c0_i32_0 = arith.constant 0 : i32
    %c0_i32_1 = arith.constant 0 : i32
    %c0_i32_2 = arith.constant 0 : i32
    return %arg0, %c0_i32, %c0_i32_0, %c0_i32_1 : i32, i32, i32, i32
  }
  func.func @transform_1(%arg0: i32, %arg1: i32) -> (i32, i32, i32) {
    %c0_i32 = arith.constant 0 : i32
    %c0_i32_0 = arith.constant 0 : i32
    return %arg0, %c0_i32, %arg1 : i32, i32, i32
  }
  func.func @transform_2(%arg0: i32, %arg1: i32) -> (i32, i32, i32, i32) {
    %c0_i32 = arith.constant 0 : i32
    %c0_i32_0 = arith.constant 0 : i32
    %c0_i32_1 = arith.constant 0 : i32
    return %arg0, %arg1, %c0_i32, %c0_i32_0 : i32, i32, i32, i32
  }
  func.func @transform_3(%arg0: i32, %arg1: i32) -> (i32, i32, i32, i32) {
    %c0_i32 = arith.constant 0 : i32
    %c0_i32_0 = arith.constant 0 : i32
    %c0_i32_1 = arith.constant 0 : i32
    return %arg0, %arg1, %c0_i32, %c0_i32_0 : i32, i32, i32, i32
  }
  func.func @transform_4(%arg0: i32, %arg1: i32) -> (i32, i32, i32) {
    %c0_i32 = arith.constant 0 : i32
    %c0_i32_0 = arith.constant 0 : i32
    return %arg0, %c0_i32, %arg1 : i32, i32, i32
  }
  func.func @transform_5(%arg0: i32, %arg1: i32) -> (i32, i32) {
    %c0_i32 = arith.constant 0 : i32
    %c0_i32_0 = arith.constant 0 : i32
    %c0_i32_1 = arith.constant 0 : i32
    return %c0_i32, %c0_i32_0 : i32, i32
  }
  func.func @transform_6(%arg0: i32, %arg1: i32) -> (i32, i32, i32) {
    %c0_i32 = arith.constant 0 : i32
    %c0_i32_0 = arith.constant 0 : i32
    return %arg0, %c0_i32, %arg1 : i32, i32, i32
  }
}

</mosaic_0001>

<bundles_post_ra>
// kernel: style_block_forward.1
= control target key start
LH: loop header
LB: loop body
LE: loop exit
PB: predicated region body
PF: predicated region fallthrough
CT: control target
= control target key end

     0   :  { %s1614_s21 = smov 0   ;;  %s1616_s22 = smov 0   ;;  %s1745_s0 = inlined_call_operand.vmem [shape: f32[2,9,8,4], index: 0, kind: input, shape index: {}]   ;;  %s1746_s1 = inlined_call_operand.vmem [shape: f32[2,4,256], index: 1, kind: input, shape index: {}]   ;;  %s1747_s2 = inlined_call_operand.vmem [shape: f32[2,2,4,16], index: 2, kind: input, shape index: {}]   ;;  %s1748_s3 = inlined_call_operand.vmem [shape: f32[2,2,4,16], index: 3, kind: input, shape index: {}]   ;;  %s1749_s4 = inlined_call_operand.vmem [shape: f32[2,1,256], index: 4, kind: input, shape index: {}]   ;;  %s1750_s5 = inlined_call_operand.vmem [shape: f32[8,1], index: 5, kind: input, shape index: {}]   ;;  %s1751_s6 = inlined_call_operand.vmem [shape: f32[2,8,256], index: 6, kind: output, shape index: {}]  }
   0x1   :  { %s1618_s23 = smov 0   ;;  %s1620_s24 = smov 0  }
   0x2   :  { %s1622_s25 = smov 0  }
   0x3 LB: > { %s25_s26 = sadd.s32 1, %s1555_s23  ;;  %s28_s27 = sadd.s32 1, %s1559_s24  ;;  %s1563_s25 = sphi %s1622_s25, %s16_s25   ;;  %s1559_s24 = sphi %s1620_s24, %s1755_s24   ;;  %s1555_s23 = sphi %s1618_s23, %s1754_s23   ;;  %s1551_s22 = sphi %s1616_s22, %s1753_s22   ;;  %s1547_s21 = sphi %s1614_s21, %s1752_s21  }
   0x4   : > { %p26_p0 = scmp.ge.s32.totalorder %s25_s26, 2  ;;  %p1365_p1 = scmp.ge.s32.totalorder %s1563_s25, 1 }
   0x5   : > { %p285_p2 = scmp.lt.s32.totalorder %s1563_s25, 5 }
   0x6   : > { %s1757_s26 = smov (%p26_p0, %s25_s26), 0  ;;  %s1759_s27 = smov (!%p26_p0, %s28_s27), %s1559_s24 }
   0x7   : > { %p286_p3 = pnand %p1365_p1, %p285_p2  ;;  %p30_p4 = scmp.ge.s32.totalorder %s1759_s27, 2 }
   0x8   : > { %p349_p5 = scmp.lt.s32.totalorder (!%p286_p3), %s1551_s22, 1  ;;  %p356_p6 = scmp.lt.s32.totalorder (!%p286_p3), %s1547_s21, 1 }
   0x9   : > { %s1761_s27 = smov (%p30_p4, %s1759_s27), 0  ;;  %289 = sbr.rel (%p286_p3) target bundleno = 496 (0x1f0), region = 44 }
   0xa   : > { %s1565_s16 = smov (!%p286_p3), 8   ;;  %s1566_s17 = smov (!%p286_p3), 24  }
   0xb   : > { %s1569_s18 = smov (!%p286_p3), 105   ;;  %s1570_s19 = smov (!%p286_p3), 121  }
   0xc   : > { %s1571_s20 = smov (!%p286_p3), 89   ;;  %s1576_s7 = smov (!%p286_p3), 103  }
   0xd   : > { %s1577_s8 = smov (!%p286_p3), 119  }
   0xe   : > { %s1763_s22 = smov (!%p349_p5, %s1551_s22), 1  ;;  %s1765_s21 = smov (!%p356_p6, %s1547_s21), 1  ;;  %v1567_v3 = vmov 0.0   ;;  %vm408_vm0 = vcmask 64512   ;;  %vm410_vm1 = vcmask 195584   ;;  %vm1568_vm2 = vmmov 0  }
   0xf   : > { %s1367_s28 = sshll.u32 %s1763_s22, 1  ;;  %1423 = vmatprep.subr.mxu0 %v1567_v3  ;;  %1428 = vmatprep.subr.mxu1 %v1567_v3  ;;  %vm413_vm3 = vcmask 326656   ;;  %v1575_v11 = vmov 0   ;;  %v1201_v12 = vld [vmem:[%s1750_s5] sm:$0xff]  ;;  %vm440_vm4 = vcmask 859136   ;;  %vm446_vm5 = vcmask 1043456  }
  0x10   : > { %s1647_s29 = sadd.s32 %s1367_s28, %s1765_s21  ;;  %1425 = vmatprep.mubr.msk.f32.mxu0 %vm1568_vm2, %v1567_v3  ;;  %1430 = vmatprep.mubr.msk.f32.mxu1 %vm1568_vm2, %v1567_v3  ;;  %s1572_s21 = smov 104   ;;  %vm442_vm6 = vcmask 31744   ;;  %vm523_vm7 = vcmask 990208   ;;  %vm606_vm8 = vcmask 728064   ;;  %vm696_vm9 = vcmask 850944  }
  0x11   : > { %s1368_s30 = sshll.u32 %s1647_s29, 2  ;;  %s1573_s28 = smov 120   ;;  %1523 = vset.pattern.permute.xlu1 %v1575_v11  ;;  %1524 = vset.pattern.permute.xlu0 %v1575_v11  ;;  %vm777_vm10 = vcmask 982016   ;;  %vm860_vm11 = vcmask 719872   ;;  %vm947_vm12 = vcmask 842752   ;;  %vm1028_vm13 = vcmask 973824  }
  0x12   : > { %s369_s9 = scalar_lea.vmem %s1747_s2, %s1368_s30  ;;  %s377_s12 = scalar_lea.vmem %s1748_s3, %s1368_s30  ;;  %vm1111_vm14 = vcmask 711680   ;;  %v415_v57 = vlaneseq }
  0x13   : > { %v394_v0 = vld [vmem:[%s369_s9] sm:$0xf]  ;;  %s361_s15 = scalar_lea.vmem %s1746_s1, %s1368_s30  ;;  %s1574_s30 = smov 88  }
  0x14   : > { %v395_v1 = vld [vmem:[%s377_s12] sm:$0xf]  ;;  %397 = vrot.lane.b32.xlu0 %v394_v0, %s1565_s16  ;;  %s1578_s9 = smov 87   ;;  %s1468_s12 = smul.u32 72, %s1763_s22  ;;  %v416_v60 = vand.u32 127, %v415_v57 }
  0x15   : > { %405 = vrot.lane.b32.xlu1 %v395_v1, %s1566_s17  ;;  %v393_v2 = vld [vmem:[%s361_s15] sm:$0xf] }
  0x16   : > { %s1672_s15 = scalar_lea.vmem %s1745_s0, %s1468_s12  ;;  %v421_v0 = vand.u32 15, %v416_v60 }
  0x17   : > { %v1376_v15 = vld [vmem:[%s1672_s15 + $0x18] sm:$0xff]  ;;  %v431_v19 = vld [vmem:[%s1672_s15] sm:$0xff]  ;;  %v1381_v23 = vld [vmem:[%s1672_s15 + $0x30] sm:$0xff] }
  0x18   : > { %401 = vrot.lane.b32.xlu0 %v393_v2, %s1566_s17  ;;  %v1385_v27 = vld [vmem:[%s1672_s15 + $0x20] sm:$0xff]  ;;  %v1384_v31 = vld [vmem:[%s1672_s15 + $0x8] sm:$0xff]  ;;  %v1390_v35 = vld [vmem:[%s1672_s15 + $0x38] sm:$0xff]  ;;  %vm429_vm15 = vcmp.ne.s32.totalorder %v421_v0, 0  ;;  %s384_s17 = scalar_lea.vmem %s1749_s4, %s1647_s29 }
  0x19   : > { %v1394_v39 = vld [vmem:[%s1672_s15 + $0x28] sm:$0xff]  ;;  %v1393_v43 = vld [vmem:[%s1672_s15 + $0x10] sm:$0xff]  ;;  %v1399_v47 = vld [vmem:[%s1672_s15 + $0x40] sm:$0xff] }
  0x86   : > { %v398_v4 = vpop.permute.xlu0 %397 }
  0x87   : > { %v406_v5 = vpop.permute.xlu1 %405  ;;  %v409_v6 = vsel %vm408_vm0, 0.0, %v398_v4  ;;  %vm430_vm0 = vcmp.ne.s32.totalorder %v421_v0, 15 }
  0x8a   : > { %v402_v7 = vpop.permute.xlu0 %401 }
  0x8b   : > { %v411_v8 = vsel %vm410_vm1, %v409_v6, %v402_v7  ;;  %v412_v9 = vsel %vm410_vm1, %v402_v7, %v406_v5 }
  0x8c   : > { %v414_v10 = vsel %vm413_vm3, %v412_v9, 0.0  ;;  %436 = vrot.lane.b32.xlu1 %v411_v8, %s1569_s18 }
  0x8d   : > { %438 = vrot.lane.b32.xlu0 %v414_v10, %s1569_s18  ;;  %s1375_s18 = sshll.u32 %s1647_s29, 3 }
  0x90   : > { %519 = vrot.lane.b32.xlu1 %v411_v8, %s1570_s19 }
  0x91   : > { %521 = vrot.lane.b32.xlu0 %v414_v10, %s1570_s19 }
  0x94   : > { %602 = vrot.lane.b32.xlu1 %v411_v8, %s1571_s20 }
  0x95   : > { %604 = vrot.lane.b32.xlu0 %v414_v10, %s1571_s20 }
  0x98   : > { %692 = vrot.lane.b32.xlu1 %v411_v8, %s1572_s21 }
  0x99   : > { %694 = vrot.lane.b32.xlu0 %v414_v10, %s1572_s21  ;;  %s392_s21 = scalar_lea.vmem %s1751_s6, %s1375_s18 }
  0x9c   : > { %773 = vrot.lane.b32.xlu1 %v411_v8, %s1573_s28 }
  0x9d   : > { %775 = vrot.lane.b32.xlu0 %v414_v10, %s1573_s28 }
  0xa0   : > { %856 = vrot.lane.b32.xlu1 %v411_v8, %s1574_s30 }
  0xa1   : > { %858 = vrot.lane.b32.xlu0 %v414_v10, %s1574_s30 }
  0xa4   : > { %943 = vrot.lane.b32.xlu1 %v411_v8, %s1576_s7 }
  0xa5   : > { %945 = vrot.lane.b32.xlu0 %v414_v10, %s1576_s7 }
  0xa8   : > { %1024 = vrot.lane.b32.xlu1 %v411_v8, %s1577_s8 }
  0xa9   : > { %1026 = vrot.lane.b32.xlu0 %v414_v10, %s1577_s8 }
  0xac   : > { %1107 = vrot.lane.b32.xlu1 %v411_v8, %s1578_s9 }
  0xad   : > { %1109 = vrot.lane.b32.xlu0 %v414_v10, %s1578_s9 }
  0xb0   : > { %1204 = vperm.xlu1 %1523, %v1201_v12  }
  0xfe   : > { %v437_v13 = vpop.permute.xlu1 %436 }
  0xff   : > { %v439_v14 = vpop.permute.xlu0 %438 }
 0x100   : > { %v441_v16 = vsel %vm440_vm4, %v437_v13, %v439_v14 }
 0x101   : > { %1424 = vmatpush3.msk.msra.mxu0 %vm446_vm5, %v441_v16 }
 0x102   : > { %v520_v17 = vpop.permute.xlu1 %519  ;;  %1433 = vmatprep.subr.mxu0 %v1567_v3  ;;  %1426 = vmatmul.mubr.msk.f32.vlgmr.msra.gmra.mxu0 %vm442_vm6, %v1376_v15  ;;  %v1402_v15 = vld [vmem:[%s384_s17] ss:$0 sm:$0xff] }
 0x103   : > { %v522_v18 = vpop.permute.xlu0 %521  ;;  %1435 = vmatprep.mubr.msk.f32.mxu0 %vm1568_vm2, %v1567_v3 }
 0x104   : > { %v524_v20 = vsel %vm523_vm7, %v520_v17, %v522_v18 }
 0x105   : > { %1429 = vmatpush3.msk.msra.mxu1 %vm446_vm5, %v524_v20 }
 0x106   : > { %v603_v21 = vpop.permute.xlu1 %602  ;;  %1438 = vmatprep.subr.mxu1 %v1567_v3  ;;  %1431 = vmatmul.mubr.msk.f32.vlgmr.msra.gmra.mxu1 %vm442_vm6, %v431_v19 }
 0x107   : > { %v605_v22 = vpop.permute.xlu0 %604  ;;  %1440 = vmatprep.mubr.msk.f32.mxu1 %vm1568_vm2, %v1567_v3 }
 0x108   : > { %v607_v24 = vsel %vm606_vm8, %v603_v21, %v605_v22 }
 0x109   : > { %1434 = vmatpush3.msk.msra.mxu0 %vm446_vm5, %v607_v24 }
 0x10a   : > { %v693_v25 = vpop.permute.xlu1 %692  ;;  %1443 = vmatprep.subr.mxu0 %v1567_v3  ;;  %1436 = vmatmul.mubr.msk.f32.vlgmr.msra.gmra.mxu0 %vm442_vm6, %v1381_v23 }
 0x10b   : > { %v695_v26 = vpop.permute.xlu0 %694  ;;  %1445 = vmatprep.mubr.msk.f32.mxu0 %vm1568_vm2, %v1567_v3 }
 0x10c   : > { %v697_v28 = vsel %vm696_vm9, %v693_v25, %v695_v26 }
 0x10d   : > { %1439 = vmatpush3.msk.msra.mxu1 %vm446_vm5, %v697_v28 }
 0x10e   : > { %v774_v29 = vpop.permute.xlu1 %773  ;;  %1441 = vmatmul.mubr.msk.f32.vlgmr.msra.gmra.mxu1 %vm442_vm6, %v1385_v27  ;;  %1448 = vmatprep.subr.mxu1 %v1567_v3 }
 0x10f   : > { %v776_v30 = vpop.permute.xlu0 %775  ;;  %1450 = vmatprep.mubr.msk.f32.mxu1 %vm1568_vm2, %v1567_v3 }
 0x110   : > { %v778_v32 = vsel %vm777_vm10, %v774_v29, %v776_v30 }
 0x111   : > { %1444 = vmatpush3.msk.msra.mxu0 %vm446_vm5, %v778_v32 }
 0x112   : > { %v857_v33 = vpop.permute.xlu1 %856  ;;  %1446 = vmatmul.mubr.msk.f32.vlgmr.msra.gmra.mxu0 %vm442_vm6, %v1384_v31  ;;  %1453 = vmatprep.subr.mxu0 %v1567_v3 }
 0x113   : > { %v859_v34 = vpop.permute.xlu0 %858  ;;  %1455 = vmatprep.mubr.msk.f32.mxu0 %vm1568_vm2, %v1567_v3 }
 0x114   : > { %v861_v36 = vsel %vm860_vm11, %v857_v33, %v859_v34 }
 0x115   : > { %1449 = vmatpush3.msk.msra.mxu1 %vm446_vm5, %v861_v36 }
 0x116   : > { %v944_v37 = vpop.permute.xlu1 %943  ;;  %1451 = vmatmul.mubr.msk.f32.vlgmr.msra.gmra.mxu1 %vm442_vm6, %v1390_v35  ;;  %1458 = vmatprep.subr.mxu1 %v1567_v3 }
 0x117   : > { %v946_v38 = vpop.permute.xlu0 %945  ;;  %1460 = vmatprep.mubr.msk.f32.mxu1 %vm1568_vm2, %v1567_v3 }
 0x118   : > { %v948_v40 = vsel %vm947_vm12, %v944_v37, %v946_v38 }
 0x119   : > { %1454 = vmatpush3.msk.msra.mxu0 %vm446_vm5, %v948_v40 }
 0x11a   : > { %v1025_v41 = vpop.permute.xlu1 %1024  ;;  %1456 = vmatmul.mubr.msk.f32.vlgmr.msra.gmra.mxu0 %vm442_vm6, %v1394_v39  ;;  %1463 = vmatprep.subr.mxu0 %v1567_v3 }
 0x11b   : > { %v1027_v42 = vpop.permute.xlu0 %1026  ;;  %1465 = vmatprep.mubr.msk.f32.mxu0 %vm1568_vm2, %v1567_v3 }
 0x11c   : > { %v1029_v44 = vsel %vm1028_vm13, %v1025_v41, %v1027_v42 }
 0x11d   : > { %1459 = vmatpush3.msk.msra.mxu1 %vm446_vm5, %v1029_v44 }
 0x11e   : > { %v1108_v45 = vpop.permute.xlu1 %1107  ;;  %1461 = vmatmul.mubr.msk.f32.vlgmr.msra.gmra.mxu1 %vm442_vm6, %v1393_v43 }
 0x11f   : > { %v1110_v46 = vpop.permute.xlu0 %1109 }
 0x120   : > { %v1112_v48 = vsel %vm1111_vm14, %v1108_v45, %v1110_v46 }
 0x121   : > { %1464 = vmatpush3.msk.msra.mxu0 %vm446_vm5, %v1112_v48 }
 0x122   : > { %1466 = vmatmul.mubr.msk.f32.vlgmr.msra.gmra.mxu0 %vm442_vm6, %v1399_v47 }
 0x12b   : > { %v1205_v17 = vpop.permute.xlu1 %1204 }
 0x1c2   : > { %v515_v49 = vpop.f32.mrf.mxu0 }
 0x1c4   : > { %v1427_v50 = vpop.f32.mrf.mxu0 }
 0x1c6   : > { %v596_v51 = vpop.f32.mrf.mxu1 }
 0x1c7   : > { %v597_v63 = vadd.f32 %v596_v51, %v515_v49 }
 0x1c8   : > { %v1432_v52 = vpop.f32.mrf.mxu1 }
 0x1ca   : > { %v679_v53 = vpop.f32.mrf.mxu0 }
 0x1cb   : > { %v683_v4 = vadd.f32 %v679_v53, %v597_v63 }
 0x1cc   : > { %v1437_v54 = vpop.f32.mrf.mxu0 }
 0x1cd   : > { %v686_v8 = vsel %vm429_vm15, %v683_v4, 0.0 }
 0x1ce   : > { %v769_v55 = vpop.f32.mrf.mxu1 }
 0x1d0   : > { %v1442_v56 = vpop.f32.mrf.mxu1 }
 0x1d2   : > { %v850_v58 = vpop.f32.mrf.mxu0 }
 0x1d3   : > { %v851_v2 = vadd.f32 %v850_v58, %v769_v55 }
 0x1d4   : > { %v1447_v59 = vpop.f32.mrf.mxu0 }
 0x1d6   : > { %v933_v61 = vpop.f32.mrf.mxu1 }
 0x1d7   : > { %v937_v6 = vadd.f32 %v933_v61, %v851_v2 }
 0x1d8   : > { %v1452_v62 = vpop.f32.mrf.mxu1 }
 0x1d9   : > { %v938_v12 = vadd.f32 %v937_v6, %v686_v8 }
 0x1da   : > { %v1020_v1 = vpop.f32.mrf.mxu0 }
 0x1dc   : > { %v1457_v3 = vpop.f32.mrf.mxu0 }
 0x1de   : > { %v1101_v5 = vpop.f32.mrf.mxu1 }
 0x1df   : > { %v1102_v9 = vadd.f32 %v1101_v5, %v1020_v1 }
 0x1e0   : > { %v1462_v7 = vpop.f32.mrf.mxu1 }
 0x1e2   : > { %v1184_v10 = vpop.f32.mrf.mxu0 }
 0x1e3   : > { %v1188_v11 = vadd.f32 %v1184_v10, %v1102_v9 }
 0x1e4   : > { %v1467_v13 = vpop.f32.mrf.mxu0 }
 0x1e5   : > { %v1191_v14 = vsel %vm430_vm0, %v1188_v11, 0.0 }
 0x1e6   : > { %v1192_v16 = vadd.f32 %v1191_v14, %v938_v12 }
 0x1e8   : > { %v1200_v18 = vadd.f32 %v1402_v15, %v1192_v16 }
 0x1ea   : > { %v1207_v19 = vadd.f32 %v1205_v17, %v1200_v18 }
 0x1ec   : > { %vm1208_vm1 = vcmp.ge.f32.partialorder %v1207_v19, 0.0  ;;  %v1209_v20 = vmul.f32 0.2, %v1207_v19 }
 0x1ee   : > { %v1210_v21 = vsel %vm1208_vm1, %v1207_v19, %v1209_v20 }
 0x1ef   : > { %1211 = vst [vmem:[%s392_s21] sm:$0xff] %v1210_v21 }
 0x1f0 PF: > { %s16_s25 = sadd.s32 1, %s1563_s25   ;;  %s1752_s21 = smov %s1555_s23 }
 0x1f1   : > { %p13_p7 = scmp.ge.s32.totalorder %s16_s25, 6   ;;  %s1753_s22 = smov %s1559_s24 }
 0x1f2   : > { %s1754_s23 = smov %s1757_s26  ;;  %s1755_s24 = smov %s1761_s27 }
 0x1f3   :  { %15 = sbr.rel (!%p13_p7) target bundleno = 3 (0x3), region = 94 }

</bundles_post_ra>
